<compile_context>
chip_gen: v5e
topology: v5e:2x2
jax: 0.10.0
libtpu: 0.0.40
codegen_flags: <defaults>
</compile_context>

<pallas_src>
import functools

import jax
import jax.numpy as jnp
from jax.experimental import pallas as pl
from jax.experimental.pallas import tpu as pltpu

_HIDDEN = 6


def _mlp_kernel(x_ref, w1_ref, b1_ref, w2_ref, b2_ref, w3_ref, b3_ref,
                w4_ref, b4_ref, o_ref):
    # x_ref: (TB, input_dim) -- natural row-major batch tile.
    x = x_ref[...]

    # Layer 1: contract (6, K) with (TB, K) over K -> (6, TB).  The
    # (TB, K) -> (K, TB) flip happens on-chip; every activation below is
    # lane-dense (batch on the 128-lane axis), so ReLU / bias adds and the
    # output store avoid masked partial-lane ops.
    h = jax.lax.dot_general(w1_ref[...], x, (((1,), (1,)), ((), ())),
                            preferred_element_type=jnp.float32) + b1_ref[...]
    h = jnp.maximum(h, 0.0)

    h = jnp.dot(w2_ref[...], h, preferred_element_type=jnp.float32) + b2_ref[...]
    h = jnp.maximum(h, 0.0)

    h = jnp.dot(w3_ref[...], h, preferred_element_type=jnp.float32) + b3_ref[...]
    h = jnp.maximum(h, 0.0)

    h = jnp.dot(w4_ref[...], h, preferred_element_type=jnp.float32) + b4_ref[...]

    o_ref[...] = h.astype(o_ref.dtype)          # (out_dim, TB), lane-dense


def _round_up(n, m):
    return ((n + m - 1) // m) * m


@functools.partial(jax.jit, static_argnames=("tb",))
def advantage_net_forward(x, params, tb=2048):
    """x: (B, input_dim) float32.
    params: w{i}: (out, in) [PyTorch layout], b{i}: (out, 1)."""
    w1, b1 = params["w1"], params["b1"]
    w2, b2 = params["w2"], params["b2"]
    w3, b3 = params["w3"], params["b3"]
    w4, b4 = params["w4"], params["b4"]

    B, input_dim = x.shape
    out_dim = w4.shape[0]

    # Batch tile: multiple of 128 (lane-dense), large to amortize grid-step
    # overhead, clamped for small batches, and capped so large batches get
    # >= 2 grid steps (v7x megacore occupancy via "parallel").
    tb_eff = max(128, (int(tb) // 128) * 128)
    tb_eff = min(tb_eff, _round_up(B, 128))
    if B > 256:
        tb_eff = min(tb_eff, _round_up(-(-B // 2), 128))
    grid = (pl.cdiv(B, tb_eff),)        # uneven last block -> masked

    # Weights/biases: full-array blocks, constant index_map -> VMEM-resident
    # across grid steps (no re-DMA).
    const = lambda a: pl.BlockSpec(a.shape, lambda i: (0, 0))

    flops = 2 * B * (input_dim * _HIDDEN + 2 * _HIDDEN * _HIDDEN
                     + _HIDDEN * out_dim)
    bytes_accessed = 4 * (B * (input_dim + out_dim)
                          + w1.size + w2.size + w3.size + w4.size
                          + b1.size + b2.size + b3.size + b4.size)

    out_t = pl.pallas_call(
        _mlp_kernel,
        out_shape=jax.ShapeDtypeStruct((out_dim, B), x.dtype),
        grid=grid,
        in_specs=[
            pl.BlockSpec((tb_eff, input_dim), lambda i: (i, 0)),
            const(w1), const(b1),
            const(w2), const(b2),
            const(w3), const(b3),
            const(w4), const(b4),
        ],
        out_specs=pl.BlockSpec((out_dim, tb_eff), lambda i: (0, i)),
        compiler_params=pltpu.CompilerParams(
            dimension_semantics=("parallel",),
        ),
        cost_estimate=pl.CostEstimate(
            flops=flops, transcendentals=0, bytes_accessed=bytes_accessed),
    )(x, w1, b1, w2, b2, w3, b3, w4, b4)

    # (out_dim, B) -> (B, out_dim): pure layout plumbing (~out_dim/input_dim
    # of the x read traffic); consumers that accept (out_dim, B) can use
    # out_t directly.
    return out_t.T


def init_params(key, input_dim, output_dim=3):
    """Standard-normal init matching nn.init.normal_ on weights and biases.
    Weights in PyTorch layout (out_features, in_features); biases (out, 1)."""
    dims = [(_HIDDEN, input_dim), (_HIDDEN, _HIDDEN),
            (_HIDDEN, _HIDDEN), (output_dim, _HIDDEN)]
    params = {}
    for i, (dout, din) in enumerate(dims, start=1):
        key, kw, kb = jax.random.split(key, 3)
        params[f"w{i}"] = jax.random.normal(kw, (dout, din), dtype=jnp.float32)
        params[f"b{i}"] = jax.random.normal(kb, (dout, 1), dtype=jnp.float32)
    return params


def reference_forward(x, params):
    h = jnp.maximum(x @ params["w1"].T + params["b1"].T, 0.0)
    h = jnp.maximum(h @ params["w2"].T + params["b2"].T, 0.0)
    h = jnp.maximum(h @ params["w3"].T + params["b3"].T, 0.0)
    return h @ params["w4"].T + params["b4"].T


if __name__ == "__main__":
    key = jax.random.PRNGKey(0)
    k_params, k_small, k_uneven, k_big = jax.random.split(key, 4)

    input_dim = 32   # e.g. DeepCFR info-state feature dim
    output_dim = 3

    params = init_params(k_params, input_dim, output_dim)

    cases = (
        ("small", k_small, 8),      # batch < one lane tile -> single masked block
        ("uneven", k_uneven, 300),  # 2 grid steps, partial last block (masked)
        ("big", k_big, 1024),       # 2 grid steps of 512 (megacore-friendly)
    )
    for name, kx, batch in cases:
        x = jax.random.normal(kx, (batch, input_dim), dtype=jnp.float32)
        out = jax.block_until_ready(advantage_net_forward(x, params))
        ref = reference_forward(x, params)
        assert out.shape == (batch, output_dim), f"{name}: bad output shape"
        assert jnp.allclose(out, ref, atol=1e-3, rtol=1e-3), \
            f"{name}: mismatch vs reference"

    print("KERNEL_OK")
</pallas_src>

<mosaic_0001>
module attributes {stable_mosaic.version = 11 : i64} {
  func.func @_mlp_kernel(%arg0: i32, %arg1: memref<128x32xf32, #tpu.memory_space<vmem>>, %arg2: memref<6x32xf32, #tpu.memory_space<vmem>>, %arg3: memref<6x1xf32, #tpu.memory_space<vmem>>, %arg4: memref<6x6xf32, #tpu.memory_space<vmem>>, %arg5: memref<6x1xf32, #tpu.memory_space<vmem>>, %arg6: memref<6x6xf32, #tpu.memory_space<vmem>>, %arg7: memref<6x1xf32, #tpu.memory_space<vmem>>, %arg8: memref<3x6xf32, #tpu.memory_space<vmem>>, %arg9: memref<3x1xf32, #tpu.memory_space<vmem>>, %arg10: memref<3x128xf32, #tpu.memory_space<vmem>>) attributes {dimension_semantics = [#tpu.dimension_semantics<parallel>], iteration_bounds = array<i64: 1>, scalar_prefetch = 0 : i64, scratch_operands = 0 : i64, tpu.core_type = #tpu.core_type<tc>, window_params = [{transform_indices = @transform_0, window_bounds = array<i64: 128, 32>}, {pipeline_mode = #tpu.pipeline_mode<synchronous>, transform_indices = @transform_1, window_bounds = array<i64: 6, 32>}, {pipeline_mode = #tpu.pipeline_mode<synchronous>, transform_indices = @transform_2, window_bounds = array<i64: 6, 1>}, {pipeline_mode = #tpu.pipeline_mode<synchronous>, transform_indices = @transform_3, window_bounds = array<i64: 6, 6>}, {pipeline_mode = #tpu.pipeline_mode<synchronous>, transform_indices = @transform_4, window_bounds = array<i64: 6, 1>}, {pipeline_mode = #tpu.pipeline_mode<synchronous>, transform_indices = @transform_5, window_bounds = array<i64: 6, 6>}, {pipeline_mode = #tpu.pipeline_mode<synchronous>, transform_indices = @transform_6, window_bounds = array<i64: 6, 1>}, {pipeline_mode = #tpu.pipeline_mode<synchronous>, transform_indices = @transform_7, window_bounds = array<i64: 3, 6>}, {pipeline_mode = #tpu.pipeline_mode<synchronous>, transform_indices = @transform_8, window_bounds = array<i64: 3, 1>}, {transform_indices = @transform_9, window_bounds = array<i64: 3, 128>}]} {
    %c0 = arith.constant 0 : index
    %c0_0 = arith.constant 0 : index
    %0 = vector.load %arg1[%c0, %c0_0] : memref<128x32xf32, #tpu.memory_space<vmem>>, vector<128x32xf32>
    %c0_1 = arith.constant 0 : index
    %c0_2 = arith.constant 0 : index
    %1 = vector.load %arg2[%c0_1, %c0_2] : memref<6x32xf32, #tpu.memory_space<vmem>>, vector<6x32xf32>
    %cst = arith.constant dense<0.000000e+00> : vector<6x128xf32>
    %2 = tpu.matmul %1, %0, %cst {dimension_numbers = #tpu.dot_dimension_numbers<[1], [1], [0], [0], [0, 0, 1, 0], [], []>} : vector<6x32xf32>, vector<128x32xf32>, vector<6x128xf32> -> vector<6x128xf32>
    %c0_3 = arith.constant 0 : index
    %c0_4 = arith.constant 0 : index
    %3 = vector.load %arg3[%c0_3, %c0_4] : memref<6x1xf32, #tpu.memory_space<vmem>>, vector<6x1xf32>
    %4 = vector.broadcast %3 : vector<6x1xf32> to vector<6x128xf32>
    %5 = arith.addf %2, %4 : vector<6x128xf32>
    %cst_5 = arith.constant 0.000000e+00 : f32
    %6 = vector.broadcast %cst_5 : f32 to vector<6x128xf32>
    %7 = arith.maximumf %5, %6 : vector<6x128xf32>
    %c0_6 = arith.constant 0 : index
    %c0_7 = arith.constant 0 : index
    %8 = vector.load %arg4[%c0_6, %c0_7] : memref<6x6xf32, #tpu.memory_space<vmem>>, vector<6x6xf32>
    %cst_8 = arith.constant dense<0.000000e+00> : vector<6x128xf32>
    %9 = tpu.matmul %8, %7, %cst_8 {dimension_numbers = #tpu.dot_dimension_numbers<[1], [0], [0], [1], [0, 0, 1, 1], [], []>} : vector<6x6xf32>, vector<6x128xf32>, vector<6x128xf32> -> vector<6x128xf32>
    %c0_9 = arith.constant 0 : index
    %c0_10 = arith.constant 0 : index
    %10 = vector.load %arg5[%c0_9, %c0_10] : memref<6x1xf32, #tpu.memory_space<vmem>>, vector<6x1xf32>
    %11 = vector.broadcast %10 : vector<6x1xf32> to vector<6x128xf32>
    %12 = arith.addf %9, %11 : vector<6x128xf32>
    %cst_11 = arith.constant 0.000000e+00 : f32
    %13 = vector.broadcast %cst_11 : f32 to vector<6x128xf32>
    %14 = arith.maximumf %12, %13 : vector<6x128xf32>
    %c0_12 = arith.constant 0 : index
    %c0_13 = arith.constant 0 : index
    %15 = vector.load %arg6[%c0_12, %c0_13] : memref<6x6xf32, #tpu.memory_space<vmem>>, vector<6x6xf32>
    %cst_14 = arith.constant dense<0.000000e+00> : vector<6x128xf32>
    %16 = tpu.matmul %15, %14, %cst_14 {dimension_numbers = #tpu.dot_dimension_numbers<[1], [0], [0], [1], [0, 0, 1, 1], [], []>} : vector<6x6xf32>, vector<6x128xf32>, vector<6x128xf32> -> vector<6x128xf32>
    %c0_15 = arith.constant 0 : index
    %c0_16 = arith.constant 0 : index
    %17 = vector.load %arg7[%c0_15, %c0_16] : memref<6x1xf32, #tpu.memory_space<vmem>>, vector<6x1xf32>
    %18 = vector.broadcast %17 : vector<6x1xf32> to vector<6x128xf32>
    %19 = arith.addf %16, %18 : vector<6x128xf32>
    %cst_17 = arith.constant 0.000000e+00 : f32
    %20 = vector.broadcast %cst_17 : f32 to vector<6x128xf32>
    %21 = arith.maximumf %19, %20 : vector<6x128xf32>
    %c0_18 = arith.constant 0 : index
    %c0_19 = arith.constant 0 : index
    %22 = vector.load %arg8[%c0_18, %c0_19] : memref<3x6xf32, #tpu.memory_space<vmem>>, vector<3x6xf32>
    %cst_20 = arith.constant dense<0.000000e+00> : vector<3x128xf32>
    %23 = tpu.matmul %22, %21, %cst_20 {dimension_numbers = #tpu.dot_dimension_numbers<[1], [0], [0], [1], [0, 0, 1, 1], [], []>} : vector<3x6xf32>, vector<6x128xf32>, vector<3x128xf32> -> vector<3x128xf32>
    %c0_21 = arith.constant 0 : index
    %c0_22 = arith.constant 0 : index
    %24 = vector.load %arg9[%c0_21, %c0_22] : memref<3x1xf32, #tpu.memory_space<vmem>>, vector<3x1xf32>
    %25 = vector.broadcast %24 : vector<3x1xf32> to vector<3x128xf32>
    %26 = arith.addf %23, %25 : vector<3x128xf32>
    %c0_23 = arith.constant 0 : index
    %c0_24 = arith.constant 0 : index
    %27 = vector.load %arg10[%c0_23, %c0_24] : memref<3x128xf32, #tpu.memory_space<vmem>>, vector<3x128xf32>
    tpu.vector_store %arg10[%c0_23, %c0_24], %26 {strides = array<i32>} : memref<3x128xf32, #tpu.memory_space<vmem>>, vector<3x128xf32>,
    return
  }
  func.func @transform_0(%arg0: i32) -> (i32, i32) {
    %c0_i32 = arith.constant 0 : i32
    %c0_i32_0 = arith.constant 0 : i32
    return %arg0, %c0_i32 : i32, i32
  }
  func.func @transform_1(%arg0: i32) -> (i32, i32) {
    %c0_i32 = arith.constant 0 : i32
    %c0_i32_0 = arith.constant 0 : i32
    %c0_i32_1 = arith.constant 0 : i32
    return %c0_i32, %c0_i32_0 : i32, i32
  }
  func.func @transform_2(%arg0: i32) -> (i32, i32) {
    %c0_i32 = arith.constant 0 : i32
    %c0_i32_0 = arith.constant 0 : i32
    %c0_i32_1 = arith.constant 0 : i32
    return %c0_i32, %c0_i32_0 : i32, i32
  }
  func.func @transform_3(%arg0: i32) -> (i32, i32) {
    %c0_i32 = arith.constant 0 : i32
    %c0_i32_0 = arith.constant 0 : i32
    %c0_i32_1 = arith.constant 0 : i32
    return %c0_i32, %c0_i32_0 : i32, i32
  }
  func.func @transform_4(%arg0: i32) -> (i32, i32) {
    %c0_i32 = arith.constant 0 : i32
    %c0_i32_0 = arith.constant 0 : i32
    %c0_i32_1 = arith.constant 0 : i32
    return %c0_i32, %c0_i32_0 : i32, i32
  }
  func.func @transform_5(%arg0: i32) -> (i32, i32) {
    %c0_i32 = arith.constant 0 : i32
    %c0_i32_0 = arith.constant 0 : i32
    %c0_i32_1 = arith.constant 0 : i32
    return %c0_i32, %c0_i32_0 : i32, i32
  }
  func.func @transform_6(%arg0: i32) -> (i32, i32) {
    %c0_i32 = arith.constant 0 : i32
    %c0_i32_0 = arith.constant 0 : i32
    %c0_i32_1 = arith.constant 0 : i32
    return %c0_i32, %c0_i32_0 : i32, i32
  }
  func.func @transform_7(%arg0: i32) -> (i32, i32) {
    %c0_i32 = arith.constant 0 : i32
    %c0_i32_0 = arith.constant 0 : i32
    %c0_i32_1 = arith.constant 0 : i32
    return %c0_i32, %c0_i32_0 : i32, i32
  }
  func.func @transform_8(%arg0: i32) -> (i32, i32) {
    %c0_i32 = arith.constant 0 : i32
    %c0_i32_0 = arith.constant 0 : i32
    %c0_i32_1 = arith.constant 0 : i32
    return %c0_i32, %c0_i32_0 : i32, i32
  }
  func.func @transform_9(%arg0: i32) -> (i32, i32) {
    %c0_i32 = arith.constant 0 : i32
    %c0_i32_0 = arith.constant 0 : i32
    return %c0_i32, %arg0 : i32, i32
  }
}

</mosaic_0001>

<bundles_post_ra>
// kernel: advantage_net_forward.1
= control target key start
LH: loop header
LB: loop body
LE: loop exit
PB: predicated region body
PF: predicated region fallthrough
CT: control target
= control target key end

     0   :  { %vm56_vm0 = vcmask 261120   ;;  %s452_s0 = inlined_call_operand.vmem [shape: f32[8,32], index: 0, kind: input, shape index: {}]   ;;  %s453_s1 = inlined_call_operand.vmem [shape: f32[6,32], index: 1, kind: input, shape index: {}]   ;;  %s454_s2 = inlined_call_operand.vmem [shape: f32[6,1], index: 2, kind: input, shape index: {}]   ;;  %s455_s3 = inlined_call_operand.vmem [shape: f32[6,6], index: 3, kind: input, shape index: {}]   ;;  %s456_s4 = inlined_call_operand.vmem [shape: f32[6,1], index: 4, kind: input, shape index: {}]   ;;  %s457_s5 = inlined_call_operand.vmem [shape: f32[6,6], index: 5, kind: input, shape index: {}]   ;;  %s458_s6 = inlined_call_operand.vmem [shape: f32[6,1], index: 6, kind: input, shape index: {}]   ;;  %s459_s7 = inlined_call_operand.vmem [shape: f32[3,6], index: 7, kind: input, shape index: {}]   ;;  %s460_s8 = inlined_call_operand.vmem [shape: f32[3,1], index: 8, kind: input, shape index: {}]   ;;  %s461_s9 = inlined_call_operand.hbm [shape: f32[3,8], index: 9, kind: output, shape index: {}]  }
   0x1   :  { %v48_v0 = vld [vmem:[%s452_s0 + $0x78] sm:$0xff]  ;;  %v47_v1 = vld [vmem:[%s452_s0 + $0x70] sm:$0xff] }
   0x2   :  { %249 = vmatpush.xpose.msk.msra.mxu0 %vm56_vm0, %v48_v0 }
   0x3   :  { %14 = vsyncpa [#allocation3], 0  ;;  %v46_v2 = vld [vmem:[%s452_s0 + $0x68] sm:$0xff]  ;;  %v45_v3 = vld [vmem:[%s452_s0 + $0x60] sm:$0xff]  ;;  %v302_v10 = vmov 0   ;;  %vm140_vm1 = vcmask 1045504  }
   0x4   :  { %v44_v4 = vld [vmem:[%s452_s0 + $0x58] sm:$0xff]  ;;  %v43_v5 = vld [vmem:[%s452_s0 + $0x50] sm:$0xff]  ;;  %v42_v6 = vld [vmem:[%s452_s0 + $0x48] sm:$0xff]  ;;  %274 = vset.pattern.permute.xlu0 %v302_v10  ;;  %275 = vset.pattern.permute.xlu1 %v302_v10  ;;  %vm136_vm2 = vcmask 48128   ;;  %s240_s11 = sshll.u32 %s461_s9, 4  ;;  %s241_s11 = int_to_ptr.hbm [resolvable:$true] %s240_s11 }
   0x5   :  { %v41_v7 = vld [vmem:[%s452_s0 + $0x40] sm:$0xff]  ;;  %v40_v8 = vld [vmem:[%s452_s0 + $0x38] sm:$0xff]  ;;  %v39_v11 = vld [vmem:[%s452_s0 + $0x30] sm:$0xff] }
   0x6   :  { %250 = vmatpush.xpose.msk.msra.mxu0 %vm56_vm0, %v47_v1  ;;  %v50_v9 = vld [vmem:[%s454_s2] sm:$0x3f]  ;;  %v38_v12 = vld [vmem:[%s452_s0 + $0x28] sm:$0xff]  ;;  %v36_v15 = vld [vmem:[%s452_s0 + $0x18] sm:$0xff] }
   0x7   :  { %53 = vperm.xlu0 %274, %v50_v9   ;;  %v130_v13 = vld [vmem:[%s456_s4] sm:$0x3f]  ;;  %v35_v16 = vld [vmem:[%s452_s0 + $0x10] sm:$0xff]  ;;  %v34_v17 = vld [vmem:[%s452_s0 + $0x8] sm:$0xff] }
   0x8   :  { %v37_v14 = vld [vmem:[%s452_s0 + $0x20] sm:$0xff] }
   0x9   :  { %v33_v18 = vld [vmem:[%s452_s0] sm:$0xff] }
   0xa   :  { %251 = vmatpush.xpose.msk.msra.mxu0 %vm56_vm0, %v46_v2  ;;  %v49_v19 = vld [vmem:[%s453_s1] sm:$0x3f] }
   0xb   :  { %v129_v24 = vld [vmem:[%s455_s3] sm:$0x3f] }
   0xc   :  { %v166_v25 = vld [vmem:[%s458_s6] sm:$0x3f] }
   0xd   :  { %169 = vperm.xlu1 %275, %v166_v25   ;;  %v200_v26 = vld [vmem:[%s460_s8] sm:$0x7]  ;;  %s303_s8 = smov [#allocation2]  }
   0xe   :  { %252 = vmatpush.xpose.msk.msra.mxu0 %vm56_vm0, %v45_v3  ;;  %v165_v31 = vld [vmem:[%s457_s5] sm:$0x3f]  ;;  %s238_s30 = sshll.u32 %s303_s8, 4  ;;  %s239_s30 = int_to_ptr.vmem [resolvable:$true] %s238_s30 }
   0xf   :  { %133 = vperm.xlu0 %274, %v130_v13   ;;  %v199_v36 = vld [vmem:[%s459_s7] sm:$0x7] }
  0x12   :  { %253 = vmatpush.xpose.msk.msra.mxu0 %vm56_vm0, %v44_v4 }
  0x15   :  { %203 = vperm.xlu1 %275, %v200_v26  }
  0x16   :  { %254 = vmatpush.xpose.msk.msra.mxu0 %vm56_vm0, %v43_v5 }
  0x1a   :  { %255 = vmatpush.xpose.msk.msra.mxu0 %vm56_vm0, %v42_v6 }
  0x1e   :  { %256 = vmatpush.xpose.msk.msra.mxu0 %vm56_vm0, %v41_v7 }
  0x22   :  { %257 = vmatpush.xpose.msk.msra.mxu0 %vm56_vm0, %v40_v8 }
  0x26   :  { %258 = vmatpush.xpose.msk.msra.mxu0 %vm56_vm0, %v39_v11 }
  0x2a   :  { %259 = vmatpush.xpose.msk.msra.mxu0 %vm56_vm0, %v38_v12 }
  0x2e   :  { %260 = vmatpush.xpose.msk.msra.mxu0 %vm56_vm0, %v37_v14 }
  0x32   :  { %261 = vmatpush.xpose.msk.msra.mxu0 %vm56_vm0, %v36_v15 }
  0x36   :  { %262 = vmatpush.xpose.msk.msra.mxu0 %vm56_vm0, %v35_v16 }
  0x3a   :  { %263 = vmatpush.xpose.msk.msra.mxu0 %vm56_vm0, %v34_v17 }
  0x3e   :  { %264 = vmatpush.xpose.msk.msra.mxu0 %vm56_vm0, %v33_v18 }
  0x41   :  { %265 = vmatmul.msk.f32.vlgmr.msra.gmra.mxu0 %vm56_vm0, %v49_v19 }
  0x79   :  { %v54_v20 = vpop.permute.xlu0 %53 }
  0x7f   :  { %v170_v32 = vpop.permute.xlu1 %169 }
  0x81   :  { %v134_v27 = vpop.permute.xlu0 %133 }
  0x87   :  { %v204_v37 = vpop.permute.xlu1 %203 }
  0xbe   :  { %v125_v21 = vpop.f32.mrf.mxu0 }
  0xbf   :  { %v126_v22 = vadd.f32 %v125_v21, %v54_v20 }
  0xc1   :  { %v128_v23 = vmax.f32 %v126_v22, 0.0 }
  0xc3   :  { %266 = vmatpush.msk.msra.mxu1 %vm140_vm1, %v128_v23 }
  0xc4   :  { %267 = vmatmul.msk.f32.vlgmr.msra.gmra.mxu1 %vm136_vm2, %v129_v24 }
 0x141   :  { %v161_v28 = vpop.f32.mrf.mxu1 }
 0x142   :  { %v162_v29 = vadd.f32 %v161_v28, %v134_v27 }
 0x144   :  { %v164_v30 = vmax.f32 %v162_v29, 0.0 }
 0x146   :  { %268 = vmatpush.msk.msra.mxu2 %vm140_vm1, %v164_v30 }
 0x147   :  { %269 = vmatmul.msk.f32.vlgmr.msra.gmra.mxu2 %vm136_vm2, %v165_v31 }
 0x1ca   :  { %v195_v33 = vpop.f32.mrf.mxu2 }
 0x1cb   :  { %v196_v34 = vadd.f32 %v195_v33, %v170_v32 }
 0x1cd   :  { %v198_v35 = vmax.f32 %v196_v34, 0.0 }
 0x1cf   :  { %270 = vmatpush.msk.msra.mxu3 %vm140_vm1, %v198_v35 }
 0x1d0   :  { %271 = vmatmul.msk.f32.vlgmr.msra.gmra.mxu3 %vm136_vm2, %v199_v36 }
 0x253   :  { %v229_v38 = vpop.f32.mrf.mxu3 }
 0x254   :  { %v230_v39 = vadd.f32 %v229_v38, %v204_v37 }
 0x256   :  { %232 = vst [vmem:[#allocation2] sm:$0x7] %v230_v39 }
 0x257   :  { %243 = dma.vmem_to_hbm [thread:$0]  %s239_s30, 64, %s241_s11, [#allocation3]  }
 0x258   :  { %300 = dma.done.wait [#allocation3], 64  }
 0x259   :  { %301 = vsyncadd [#allocation3], 4294967232 }
 0x25a   :  { %248 = vsyncpa [#allocation3], 1 }

</bundles_post_ra>
